<compile_context>
chip_gen: v7x
topology: tpu7x:2x2x1
jax: 0.10.0
libtpu: 0.0.40
codegen_flags: <defaults>
</compile_context>

<pallas_src>
import functools

import numpy as np
import jax
import jax.numpy as jnp
from jax.experimental import pallas as pl
from jax.experimental.pallas import tpu as pltpu


# ----------------------------------------------------------------------------
# Host-side (numpy, trace-time) constant factories.
# ----------------------------------------------------------------------------
def _cubic_weight(d, a=-0.75):
    d = abs(float(d))
    if d <= 1.0:
        return (a + 2.0) * d ** 3 - (a + 3.0) * d ** 2 + 1.0
    if d < 2.0:
        return a * d ** 3 - 5.0 * a * d ** 2 + 8.0 * a * d - 4.0 * a
    return 0.0


def bicubic_upsample_matrix(in_size, scale=2):
    """Dense [scale*in, in] matrix reproducing torch.nn.Upsample(scale_factor=2,
    mode='bicubic', align_corners=False) along one axis (border-clamped taps).
    NOTE: validated against an internal JAX reference; an independent PyTorch
    golden cannot be generated in-script (no torch dependency allowed)."""
    out_size = in_size * scale
    m = np.zeros((out_size, in_size), dtype=np.float32)
    for o in range(out_size):
        src = (o + 0.5) / scale - 0.5
        x0 = int(np.floor(src))
        t = src - x0
        for k in range(-1, 3):
            idx = min(max(x0 + k, 0), in_size - 1)
            m[o, idx] += _cubic_weight(k - t)
    return m


def _reflection_indices(length, pad):
    """Indices reproducing ReflectionPad (border excluded) along one axis."""
    idx = []
    for m in range(length + 2 * pad):
        t = m - pad
        if t < 0:
            t = -t
        elif t >= length:
            t = 2 * (length - 1) - t
        idx.append(t)
    return np.asarray(idx, dtype=np.int64)


def _padded_upsample_matrix(in_size, pad, scale=2):
    """[scale*in + 2*pad, in] matrix = ReflectionPad(pad) o bicubic_upsample."""
    u = bicubic_upsample_matrix(in_size, scale)           # (scale*in, in)
    r = _reflection_indices(in_size * scale, pad)         # (scale*in + 2p,)
    return u[r, :]                                        # (scale*in + 2p, in)


# ----------------------------------------------------------------------------
# Fused Pallas kernel: one image per grid step, everything VMEM-resident.
# ----------------------------------------------------------------------------
def _fused_kernel(kw, ow, x_ref, bcat_ref, g_ref, b_ref, o_ref):
    # x_ref block: (1, Cin*H, W);  bcat: (W, KW*OW);  g: (KW, Cout*OH, Cin*H)
    # Width upsample + width reflection-pad + horizontal conv taps (as KW
    # column groups), batched over all channels of the image:
    t1 = jnp.dot(x_ref[0], bcat_ref[...],
                 preferred_element_type=jnp.float32)       # (Cin*H, KW*OW)
    # Height upsample + height reflection-pad + vertical taps + channel mix,
    # folded into G_j; accumulate over the KW horizontal taps:
    acc = jnp.dot(g_ref[0], t1[:, :ow],
                  preferred_element_type=jnp.float32)      # (Cout*OH, OW)
    for j in range(1, kw):
        acc = acc + jnp.dot(g_ref[j], t1[:, j * ow:(j + 1) * ow],
                            preferred_element_type=jnp.float32)
    o_ref[0] = acc + b_ref[...]                            # bias: (Cout*OH, 1)


def upsample_block_forward(x, weight, bias, kernel_size, stride):
    """Forward of UpsampleBlock: Conv2d(ReflectionPad2d(k//2)(Upsample_x2(x)))."""
    n, cin, h, w = x.shape
    cout, _, kh, kw = weight.shape
    p = kernel_size // 2
    ph, pw = 2 * h + 2 * p, 2 * w + 2 * p
    oh = (ph - kh) // stride + 1
    ow = (pw - kw) // stride + 1

    # Weight-independent constants (numpy at trace time).
    a_mat = _padded_upsample_matrix(h, p)                  # (PH, H)
    b_mat = _padded_upsample_matrix(w, p)                  # (PW, W)
    a_taps = np.stack(
        [a_mat[i:i + (oh - 1) * stride + 1:stride, :] for i in range(kh)])   # (KH, OH, H)
    bcat = np.concatenate(
        [b_mat[j:j + (ow - 1) * stride + 1:stride, :].T for j in range(kw)],
        axis=1).astype(np.float32)                         # (W, KW*OW)

    # Fold conv weights + vertical taps + height upsample/pad into G (tiny einsum).
    wf = weight.astype(jnp.float32)
    g = jnp.einsum('ocij,irh->jorch', wf, jnp.asarray(a_taps, dtype=jnp.float32))
    g = g.reshape(kw, cout * oh, cin * h)                  # (KW, Cout*OH, Cin*H)
    bias_col = jnp.repeat(bias.astype(jnp.float32), oh).reshape(cout * oh, 1)

    x2 = x.astype(jnp.float32).reshape(n, cin * h, w)      # free reshape

    out = pl.pallas_call(
        functools.partial(_fused_kernel, kw, ow),
        out_shape=jax.ShapeDtypeStruct((n, cout * oh, ow), jnp.float32),
        grid=(n,),
        in_specs=[
            pl.BlockSpec((1, cin * h, w), lambda i: (i, 0, 0)),
            pl.BlockSpec((w, kw * ow), lambda i: (0, 0)),
            pl.BlockSpec((kw, cout * oh, cin * h), lambda i: (0, 0, 0)),
            pl.BlockSpec((cout * oh, 1), lambda i: (0, 0)),
        ],
        out_specs=pl.BlockSpec((1, cout * oh, ow), lambda i: (i, 0, 0)),
        compiler_params=pltpu.CompilerParams(
            dimension_semantics=("parallel",)),  # N>=2 keeps both v7x TCs busy
    )(x2, jnp.asarray(bcat), g, bias_col)

    return out.reshape(n, cout, oh, ow)                    # free reshape to NCHW


# ----------------------------------------------------------------------------
# Reference (pure JAX) used to sanity-check the fused kernel.
# ----------------------------------------------------------------------------
def _reference_forward(x, weight, bias, kernel_size, stride):
    n, c, h, w = x.shape
    uh = jnp.asarray(bicubic_upsample_matrix(h))
    uw = jnp.asarray(bicubic_upsample_matrix(w))
    up = jnp.einsum("ph,nchw,qw->ncpq", uh, x.astype(jnp.float32), uw)
    p = kernel_size // 2
    padded = jnp.pad(up, ((0, 0), (0, 0), (p, p), (p, p)), mode="reflect")
    out = jax.lax.conv_general_dilated(
        padded, weight.astype(jnp.float32),
        window_strides=(stride, stride), padding="VALID",
        dimension_numbers=("NCHW", "OIHW", "NCHW"))
    return out + bias.reshape(1, -1, 1, 1)


if __name__ == "__main__":
    # UpsampleBlock(in_channels=4, out_channels=8, kernel_size=3, stride=1)
    in_channels, out_channels, kernel_size, stride = 4, 8, 3, 1
    N, H, W = 2, 16, 16

    key = jax.random.PRNGKey(0)
    kx, k_w, kb = jax.random.split(key, 3)
    x = jax.random.normal(kx, (N, in_channels, H, W), dtype=jnp.float32)
    weight = 0.1 * jax.random.normal(
        k_w, (out_channels, in_channels, kernel_size, kernel_size), dtype=jnp.float32)
    bias = 0.1 * jax.random.normal(kb, (out_channels,), dtype=jnp.float32)

    out = upsample_block_forward(x, weight, bias, kernel_size, stride)
    out = jax.block_until_ready(out)

    ref = jax.block_until_ready(_reference_forward(x, weight, bias, kernel_size, stride))
    assert out.shape == (N, out_channels, 2 * H, 2 * W), out.shape
    err = float(jnp.max(jnp.abs(out - ref)))
    assert jnp.allclose(out, ref, atol=1e-4, rtol=1e-4), err

    print("KERNEL_OK")
</pallas_src>

<mosaic_0001>
module attributes {stable_mosaic.version = 11 : i64} {
  func.func @_fused_kernel(%arg0: i32, %arg1: memref<1x64x16xf32, #tpu.memory_space<vmem>>, %arg2: memref<16x96xf32, #tpu.memory_space<vmem>>, %arg3: memref<3x256x64xf32, #tpu.memory_space<vmem>>, %arg4: memref<256x1xf32, #tpu.memory_space<vmem>>, %arg5: memref<1x256x32xf32, #tpu.memory_space<vmem>>) attributes {dimension_semantics = [#tpu.dimension_semantics<parallel>], iteration_bounds = array<i64: 2>, scalar_prefetch = 0 : i64, scratch_operands = 0 : i64, tpu.core_type = #tpu.core_type<tc>, window_params = [{transform_indices = @transform_0, window_bounds = array<i64: 1, 64, 16>}, {pipeline_mode = #tpu.pipeline_mode<synchronous>, transform_indices = @transform_1, window_bounds = array<i64: 16, 96>}, {pipeline_mode = #tpu.pipeline_mode<synchronous>, transform_indices = @transform_2, window_bounds = array<i64: 3, 256, 64>}, {pipeline_mode = #tpu.pipeline_mode<synchronous>, transform_indices = @transform_3, window_bounds = array<i64: 256, 1>}, {transform_indices = @transform_4, window_bounds = array<i64: 1, 256, 32>}]} {
    %c0 = arith.constant 0 : index
    %c0_0 = arith.constant 0 : index
    %c0_1 = arith.constant 0 : index
    %0 = vector.load %arg1[%c0, %c0_0, %c0_1] : memref<1x64x16xf32, #tpu.memory_space<vmem>>, vector<1x64x16xf32>
    %1 = vector.shape_cast %0 : vector<1x64x16xf32> to vector<64x16xf32>
    %c0_2 = arith.constant 0 : index
    %c0_3 = arith.constant 0 : index
    %2 = vector.load %arg2[%c0_2, %c0_3] : memref<16x96xf32, #tpu.memory_space<vmem>>, vector<16x96xf32>
    %cst = arith.constant dense<0.000000e+00> : vector<64x96xf32>
    %3 = tpu.matmul %1, %2, %cst {dimension_numbers = #tpu.dot_dimension_numbers<[1], [0], [0], [1], [0, 0, 1, 1], [], []>} : vector<64x16xf32>, vector<16x96xf32>, vector<64x96xf32> -> vector<64x96xf32>
    %c0_4 = arith.constant 0 : index
    %c0_5 = arith.constant 0 : index
    %c0_6 = arith.constant 0 : index
    %4 = vector.load %arg3[%c0_4, %c0_5, %c0_6] : memref<3x256x64xf32, #tpu.memory_space<vmem>>, vector<1x256x64xf32>
    %5 = vector.shape_cast %4 : vector<1x256x64xf32> to vector<256x64xf32>
    %6 = vector.extract_strided_slice %3 {offsets = [0, 0], sizes = [64, 32], strides = [1, 1]} : vector<64x96xf32> to vector<64x32xf32>
    %cst_7 = arith.constant dense<0.000000e+00> : vector<256x32xf32>
    %7 = tpu.matmul %5, %6, %cst_7 {dimension_numbers = #tpu.dot_dimension_numbers<[1], [0], [0], [1], [0, 0, 1, 1], [], []>} : vector<256x64xf32>, vector<64x32xf32>, vector<256x32xf32> -> vector<256x32xf32>
    %c1 = arith.constant 1 : index
    %c0_8 = arith.constant 0 : index
    %c0_9 = arith.constant 0 : index
    %8 = vector.load %arg3[%c1, %c0_8, %c0_9] : memref<3x256x64xf32, #tpu.memory_space<vmem>>, vector<1x256x64xf32>
    %9 = vector.shape_cast %8 : vector<1x256x64xf32> to vector<256x64xf32>
    %10 = vector.extract_strided_slice %3 {offsets = [0, 32], sizes = [64, 32], strides = [1, 1]} : vector<64x96xf32> to vector<64x32xf32>
    %cst_10 = arith.constant dense<0.000000e+00> : vector<256x32xf32>
    %11 = tpu.matmul %9, %10, %cst_10 {dimension_numbers = #tpu.dot_dimension_numbers<[1], [0], [0], [1], [0, 0, 1, 1], [], []>} : vector<256x64xf32>, vector<64x32xf32>, vector<256x32xf32> -> vector<256x32xf32>
    %12 = arith.addf %7, %11 : vector<256x32xf32>
    %c2 = arith.constant 2 : index
    %c0_11 = arith.constant 0 : index
    %c0_12 = arith.constant 0 : index
    %13 = vector.load %arg3[%c2, %c0_11, %c0_12] : memref<3x256x64xf32, #tpu.memory_space<vmem>>, vector<1x256x64xf32>
    %14 = vector.shape_cast %13 : vector<1x256x64xf32> to vector<256x64xf32>
    %15 = vector.extract_strided_slice %3 {offsets = [0, 64], sizes = [64, 32], strides = [1, 1]} : vector<64x96xf32> to vector<64x32xf32>
    %cst_13 = arith.constant dense<0.000000e+00> : vector<256x32xf32>
    %16 = tpu.matmul %14, %15, %cst_13 {dimension_numbers = #tpu.dot_dimension_numbers<[1], [0], [0], [1], [0, 0, 1, 1], [], []>} : vector<256x64xf32>, vector<64x32xf32>, vector<256x32xf32> -> vector<256x32xf32>
    %17 = arith.addf %12, %16 : vector<256x32xf32>
    %c0_14 = arith.constant 0 : index
    %c0_15 = arith.constant 0 : index
    %18 = vector.load %arg4[%c0_14, %c0_15] : memref<256x1xf32, #tpu.memory_space<vmem>>, vector<256x1xf32>
    %19 = vector.broadcast %18 : vector<256x1xf32> to vector<256x32xf32>
    %20 = arith.addf %17, %19 : vector<256x32xf32>
    %c0_16 = arith.constant 0 : index
    %c0_17 = arith.constant 0 : index
    %c0_18 = arith.constant 0 : index
    %21 = vector.load %arg5[%c0_16, %c0_17, %c0_18] : memref<1x256x32xf32, #tpu.memory_space<vmem>>, vector<1x256x32xf32>
    %22 = vector.shape_cast %21 : vector<1x256x32xf32> to vector<256x32xf32>
    %23 = vector.shape_cast %20 : vector<256x32xf32> to vector<1x256x32xf32>
    tpu.vector_store %arg5[%c0_16, %c0_17, %c0_18], %23 {strides = array<i32>} : memref<1x256x32xf32, #tpu.memory_space<vmem>>, vector<1x256x32xf32>,
    return
  }
  func.func @transform_0(%arg0: i32) -> (i32, i32, i32) {
    %c0_i32 = arith.constant 0 : i32
    %c0_i32_0 = arith.constant 0 : i32
    %c0_i32_1 = arith.constant 0 : i32
    return %arg0, %c0_i32, %c0_i32_0 : i32, i32, i32
  }
  func.func @transform_1(%arg0: i32) -> (i32, i32) {
    %c0_i32 = arith.constant 0 : i32
    %c0_i32_0 = arith.constant 0 : i32
    %c0_i32_1 = arith.constant 0 : i32
    return %c0_i32, %c0_i32_0 : i32, i32
  }
  func.func @transform_2(%arg0: i32) -> (i32, i32, i32) {
    %c0_i32 = arith.constant 0 : i32
    %c0_i32_0 = arith.constant 0 : i32
    %c0_i32_1 = arith.constant 0 : i32
    %c0_i32_2 = arith.constant 0 : i32
    return %c0_i32, %c0_i32_0, %c0_i32_1 : i32, i32, i32
  }
  func.func @transform_3(%arg0: i32) -> (i32, i32) {
    %c0_i32 = arith.constant 0 : i32
    %c0_i32_0 = arith.constant 0 : i32
    %c0_i32_1 = arith.constant 0 : i32
    return %c0_i32, %c0_i32_0 : i32, i32
  }
  func.func @transform_4(%arg0: i32) -> (i32, i32, i32) {
    %c0_i32 = arith.constant 0 : i32
    %c0_i32_0 = arith.constant 0 : i32
    %c0_i32_1 = arith.constant 0 : i32
    return %arg0, %c0_i32, %c0_i32_0 : i32, i32, i32
  }
}

</mosaic_0001>

<bundles_post_ra>
// kernel: tpu_custom_call.1
= control target key start
LH: loop header
LB: loop body
LE: loop exit
PB: predicated region body
PF: predicated region fallthrough
CT: control target
= control target key end

     0   :  { %s2532_s15 = smov 0   ;;  %s3221_s0 = inlined_call_operand.vmem [shape: f32[2,64,16], index: 0, kind: input, shape index: {}]   ;;  %s3222_s1 = inlined_call_operand.vmem [shape: f32[16,96], index: 1, kind: input, shape index: {}]   ;;  %s3223_s2 = inlined_call_operand.vmem [shape: f32[3,256,64], index: 2, kind: input, shape index: {}]   ;;  %s3224_s3 = inlined_call_operand.vmem [shape: f32[256,1], index: 3, kind: input, shape index: {}]   ;;  %s3225_s4 = inlined_call_operand.vmem [shape: f32[2,256,32], index: 4, kind: output, shape index: {}]  }
   0x1 LB: > { %s1800_s16 = sadd.s32 4294967295, %s2502_s15   ;;  %p1804_p0 = scmp.ge.s32.totalorder %s2502_s15, 1  ;;  %s2502_s15 = sphi %s2532_s15, %s14_s15  }
   0x2   : > { %p162_p1 = scmp.lt.s32.totalorder %s2502_s15, 3 }
   0x4   : > { %p163_p2 = pnand %p1804_p0, %p162_p1 }
   0x5   : > { %v206_v0 = vld [vmem:[%s3222_s1] sm:$0xff] (!%p163_p2)  ;;  %v207_v1 = vld [vmem:[%s3222_s1 + $0x8] sm:$0xff] (!%p163_p2)  ;;  %p188_p3 = scmp.lt.s32.totalorder (!%p163_p2), %s1800_s16, 1  ;;  %vm208_vm0 = vcmask (!%p163_p2), 130048   ;;  %v352_v11 = vld [vmem:[%s3223_s2 + $0x70] sm:$0xff] (!%p163_p2)  ;;  %vm435_vm1 = vcmask (!%p163_p2), 523264  }
   0x6   : > { %166 = sbr.rel (%p163_p2) target bundleno = 674 (0x2a2), region = 36  ;;  %v2319_v2 = vpack.c.bf16 (!%p163_p2), %v207_v1, %v206_v0  ;;  %2228 = vmatprep.mubr.msk.f32.mxu1 (!%p163_p2), %vm435_vm1, %v352_v11  ;;  %s2504_s27 = smov (!%p163_p2), 96   ;;  %v1817_v22 = vld [vmem:[%s3223_s2 + $0x100] sm:$0xff] (!%p163_p2)  ;;  %v353_v29 = vld [vmem:[%s3223_s2 + $0x78] sm:$0xff] (!%p163_p2)  ;;  %v355_v31 = vld [vmem:[%s3223_s2 + $0x88] sm:$0xff] (!%p163_p2)  ;;  %v2506_v47 = vmov (!%p163_p2), 0  }
   0x7   : > { %s2505_s30 = smov (!%p163_p2), 64   ;;  %v354_v30 = vld [vmem:[%s3223_s2 + $0x80] sm:$0xff] (!%p163_p2)  ;;  %v356_v32 = vld [vmem:[%s3223_s2 + $0x90] sm:$0xff] (!%p163_p2)  ;;  %v357_v33 = vld [vmem:[%s3223_s2 + $0x98] sm:$0xff] (!%p163_p2)  ;;  %2495 = vset.pattern.permute.xlu1 (!%p163_p2), %v2506_v47  ;;  %2494 = vset.pattern.permute.xlu0 (!%p163_p2), %v2506_v47  ;;  %vm1712_vm2 = vcmask (!%p163_p2), 261120  }
   0x8   : > { %2320 = vmatprep.subr.bf16.mxu0 (!%p163_p2), %v2319_v2  ;;  %v358_v34 = vld [vmem:[%s3223_s2 + $0xa0] sm:$0xff] (!%p163_p2)  ;;  %v359_v35 = vld [vmem:[%s3223_s2 + $0xa8] sm:$0xff] (!%p163_p2)  ;;  %v360_v36 = vld [vmem:[%s3223_s2 + $0xb0] sm:$0xff] (!%p163_p2) }
   0x9   : > { %2322 = vmatpush3.bf16.msra.mxu0 (!%p163_p2), %v2319_v2  ;;  %v361_v37 = vld [vmem:[%s3223_s2 + $0xb8] sm:$0xff] (!%p163_p2)  ;;  %v362_v38 = vld [vmem:[%s3223_s2 + $0xc0] sm:$0xff] (!%p163_p2)  ;;  %v363_v39 = vld [vmem:[%s3223_s2 + $0xc8] sm:$0xff] (!%p163_p2) }
   0xa   : > { %v364_v40 = vld [vmem:[%s3223_s2 + $0xd0] sm:$0xff] (!%p163_p2)  ;;  %v365_v41 = vld [vmem:[%s3223_s2 + $0xd8] sm:$0xff] (!%p163_p2)  ;;  %v366_v42 = vld [vmem:[%s3223_s2 + $0xe0] sm:$0xff] (!%p163_p2) }
   0xb   : > { %v367_v43 = vld [vmem:[%s3223_s2 + $0xe8] sm:$0xff] (!%p163_p2)  ;;  %v368_v44 = vld [vmem:[%s3223_s2 + $0xf0] sm:$0xff] (!%p163_p2)  ;;  %v369_v45 = vld [vmem:[%s3223_s2 + $0xf8] sm:$0xff] (!%p163_p2) }
   0xc   : > { %v1913_v46 = vld [vmem:[%s3223_s2 + $0x200] sm:$0xff] (!%p163_p2)  ;;  %v1489_v49 = vld [vmem:[%s3224_s3 + $0x8] sm:$0xff] (!%p163_p2)  ;;  %v1491_v50 = vld [vmem:[%s3224_s3 + $0x18] sm:$0xff] (!%p163_p2) }
   0xd   : > { %s3227_s16 = smov (!%p188_p3, %s1800_s16), 1  ;;  %v1488_v48 = vld [vmem:[%s3224_s3] sm:$0xff]  ;;  %v1490_v51 = vld [vmem:[%s3224_s3 + $0x10] sm:$0xff]  ;;  %v1493_v52 = vld [vmem:[%s3224_s3 + $0x28] sm:$0xff] }
   0xe   : > { %s1979_s21 = sshll.u32 %s3227_s16, 6  ;;  %v1492_v53 = vld [vmem:[%s3224_s3 + $0x20] sm:$0xff]  ;;  %v1495_v54 = vld [vmem:[%s3224_s3 + $0x38] sm:$0xff]  ;;  %v1494_v55 = vld [vmem:[%s3224_s3 + $0x30] sm:$0xff]  ;;  %s1980_s19 = sshll.u32 %s3227_s16, 8 }
   0xf   : > { %s192_s24 = scalar_lea.vmem %s3221_s0, %s1979_s21  ;;  %v1497_v56 = vld [vmem:[%s3224_s3 + $0x48] sm:$0xff]  ;;  %v1496_v57 = vld [vmem:[%s3224_s3 + $0x40] sm:$0xff]  ;;  %v1499_v58 = vld [vmem:[%s3224_s3 + $0x58] sm:$0xff]  ;;  %s3124_s22 = scalar_lea.vmem %s3225_s4, %s1980_s19 }
  0x10   : > { %v198_v3 = vld [vmem:[%s192_s24] sm:$0xff]  ;;  %v199_v4 = vld [vmem:[%s192_s24 + $0x8] sm:$0xff]  ;;  %v200_v5 = vld [vmem:[%s192_s24 + $0x10] sm:$0xff] }
  0x11   : > { %2115 = vmatprep.mubr.msk.f32.mxu0 %vm208_vm0, %v198_v3  ;;  %v201_v6 = vld [vmem:[%s192_s24 + $0x18] sm:$0xff]  ;;  %v202_v7 = vld [vmem:[%s192_s24 + $0x20] sm:$0xff]  ;;  %v203_v8 = vld [vmem:[%s192_s24 + $0x28] sm:$0xff] }
  0x12   : > { %2116 = vmatmul.mubr.msk.f32.vlgmr.msra.gmra.mrb[0].mxu0 %vm208_vm0, %v199_v4  ;;  %v204_v9 = vld [vmem:[%s192_s24 + $0x30] sm:$0xff]  ;;  %v205_v10 = vld [vmem:[%s192_s24 + $0x38] sm:$0xff]  ;;  %v1501_v60 = vld [vmem:[%s3224_s3 + $0x68] sm:$0xff] }
  0x13   : > { %2118 = vmatprep.mubr.msk.f32.mxu0 %vm208_vm0, %v200_v5  ;;  %v1498_v59 = vld [vmem:[%s3224_s3 + $0x50] sm:$0xff]  ;;  %v1500_v61 = vld [vmem:[%s3224_s3 + $0x60] sm:$0xff]  ;;  %v1503_v62 = vld [vmem:[%s3224_s3 + $0x78] sm:$0xff] }
  0x14   : > { %v1502_v63 = vld [vmem:[%s3224_s3 + $0x70] sm:$0xff]  ;;  %v1505_v0 = vld [vmem:[%s3224_s3 + $0x88] sm:$0xff]  ;;  %v1504_v1 = vld [vmem:[%s3224_s3 + $0x80] sm:$0xff] }
  0x15   : > { %v1507_v2 = vld [vmem:[%s3224_s3 + $0x98] sm:$0xff]  ;;  %v1506_v3 = vld [vmem:[%s3224_s3 + $0x90] sm:$0xff]  ;;  %v1509_v4 = vld [vmem:[%s3224_s3 + $0xa8] sm:$0xff] }
  0x16   : > { %2119 = vmatmul.mubr.msk.f32.gmra.mrb[2].mxu0 %vm208_vm0, %v201_v6  ;;  %v1508_v5 = vld [vmem:[%s3224_s3 + $0xa0] sm:$0xff]  ;;  %v1511_v6 = vld [vmem:[%s3224_s3 + $0xb8] sm:$0xff]  ;;  %v1514_v11 = vld [vmem:[%s3224_s3 + $0xd0] sm:$0xff] }
  0x17   : > { %2121 = vmatprep.mubr.msk.f32.mxu0 %vm208_vm0, %v202_v7  ;;  %v1510_v7 = vld [vmem:[%s3224_s3 + $0xb0] sm:$0xff] }
  0x1a   : > { %2122 = vmatmul.mubr.msk.f32.gmra.mrb[4].mxu0 %vm208_vm0, %v203_v8  ;;  %v1513_v8 = vld [vmem:[%s3224_s3 + $0xc8] sm:$0xff] }
  0x1b   : > { %2124 = vmatprep.mubr.msk.f32.mxu0 %vm208_vm0, %v204_v9  ;;  %v1512_v9 = vld [vmem:[%s3224_s3 + $0xc0] sm:$0xff] }
  0x1e   : > { %2125 = vmatmul.mubr.msk.f32.gmra.mrb[6].mxu0 %vm208_vm0, %v205_v10  ;;  %v1515_v10 = vld [vmem:[%s3224_s3 + $0xd8] sm:$0xff] }
  0x1f   : > { %2143 = vmatprep.mubr.msk.f32.mxu0 %vm435_vm1, %v1817_v22  ;;  %v1518_v22 = vld [vmem:[%s3224_s3 + $0xf0] sm:$0xff] }
  0xe5   : > { %v2117_v12 = vpop.f32.mrb[0].mxu0 }
  0xe6   : > { %v299_v13 = vpop.f32.mrb[1].mxu0 }
  0xe7   : > { %v2474_v14 = vpack.i.bf16 %v2117_v12, %v299_v13  ;;  %v2564_v15 = vpack.c.bf16 %v2117_v12, %v299_v13  ;;  %v1517_v13 = vld [vmem:[%s3224_s3 + $0xe8] sm:$0xff] }
  0xe9   : > { %2455 = vrot.lane.b32.xlu0 %v2474_v14, %s2504_s27  ;;  %v2120_v16 = vpop.f32.mrb[2].mxu0  ;;  %2371 = vmatprep.subr.bf16.mxu1 %v2564_v15 }
  0xea   : > { %v309_v17 = vpop.f32.mrb[3].mxu0  ;;  %2375 = vmatpush3.bf16.msra.mxu1 %v2564_v15 }
  0xeb   : > { %v2479_v18 = vpack.i.bf16 %v2120_v16, %v309_v17  ;;  %v2568_v19 = vpack.c.bf16 %v2120_v16, %v309_v17 }
  0xed   : > { %2460 = vrot.lane.b32.xlu0 %v2479_v18, %s2504_s27  ;;  %v2123_v20 = vpop.f32.mrb[4].mxu0  ;;  %2372 = vmatprep.subr.bf16.mxu1 %v2568_v19 }
  0xee   : > { %v319_v21 = vpop.f32.mrb[5].mxu0  ;;  %2376 = vmatpush3.bf16.msra.mxu1 %v2568_v19 }
  0xef   : > { %v2484_v23 = vpack.i.bf16 %v2123_v20, %v319_v21  ;;  %v2575_v24 = vpack.c.bf16 %v2123_v20, %v319_v21  ;;  %v1519_v21 = vld [vmem:[%s3224_s3 + $0xf8] sm:$0xff] }
  0xf1   : > { %2475 = vrot.lane.b32.xlu0 %v2474_v14, %s2505_s30  ;;  %2465 = vrot.lane.b32.xlu1 %v2484_v23, %s2504_s27  ;;  %v2126_v25 = vpop.f32.mrb[6].mxu0  ;;  %v1516_v14 = vld [vmem:[%s3224_s3 + $0xe0] sm:$0xff] }
  0xf2   : > { %2373 = vmatprep.subr.bf16.mxu1 %v2575_v24  ;;  %v329_v26 = vpop.f32.mrb[7].mxu0 }
  0xf3   : > { %v2489_v27 = vpack.i.bf16 %v2126_v25, %v329_v26  ;;  %v2579_v28 = vpack.c.bf16 %v2126_v25, %v329_v26  ;;  %2377 = vmatpush3.bf16.msra.mxu1 %v2575_v24 }
  0xf5   : > { %2485 = vrot.lane.b32.xlu0 %v2484_v23, %s2505_s30  ;;  %2470 = vrot.lane.b32.xlu1 %v2489_v27, %s2504_s27 }
  0xf6   : > { %2374 = vmatprep.subr.bf16.mxu1 %v2579_v28 }
  0xf7   : > { %2378 = vmatpush3.bf16.msra.mxu1 %v2579_v28 }
  0xf9   : > { %2480 = vrot.lane.b32.xlu1 %v2479_v18, %s2505_s30  ;;  %1522 = vperm.xlu0 %2494, %v1488_v48  }
  0xfa   : > { %2229 = vmatmul.mubr.msk.f32.vlgmr.msra.gmra.mrb[0].mxu1 %vm435_vm1, %v353_v29 }
  0xfb   : > { %2231 = vmatprep.mubr.msk.f32.mxu1 %vm435_vm1, %v354_v30 }
  0xfd   : > { %2490 = vrot.lane.b32.xlu1 %v2489_v27, %s2505_s30  ;;  %1537 = vperm.xlu0 %2494, %v1491_v50  }
  0xfe   : > { %2232 = vmatmul.mubr.msk.f32.gmra.mrb[2].mxu1 %vm435_vm1, %v355_v31 }
  0xff   : > { %2234 = vmatprep.mubr.msk.f32.mxu1 %vm435_vm1, %v356_v32 }
 0x101   : > { %1527 = vperm.xlu1 %2495, %v1489_v49   ;;  %1547 = vperm.xlu0 %2494, %v1493_v52   ;;  %v1819_v52 = vld [vmem:[%s3223_s2 + $0x110] sm:$0xff] }
 0x102   : > { %2235 = vmatmul.mubr.msk.f32.gmra.mrb[4].mxu1 %vm435_vm1, %v357_v33 }
 0x103   : > { %2237 = vmatprep.mubr.msk.f32.mxu1 %vm435_vm1, %v358_v34 }
 0x105   : > { %1532 = vperm.xlu1 %2495, %v1490_v51   ;;  %1557 = vperm.xlu0 %2494, %v1495_v54  }
 0x106   : > { %2238 = vmatmul.mubr.msk.f32.gmra.mrb[6].mxu1 %vm435_vm1, %v359_v35 }
 0x107   : > { %2240 = vmatprep.mubr.msk.f32.mxu1 %vm435_vm1, %v360_v36 }
 0x109   : > { %1542 = vperm.xlu1 %2495, %v1492_v53   ;;  %1567 = vperm.xlu0 %2494, %v1497_v56   ;;  %v1820_v53 = vld [vmem:[%s3223_s2 + $0x118] sm:$0xff]  ;;  %v1823_v56 = vld [vmem:[%s3223_s2 + $0x130] sm:$0xff] }
 0x10a   : > { %2241 = vmatmul.mubr.msk.f32.gmra.mrb[8].mxu1 %vm435_vm1, %v361_v37 }
 0x10b   : > { %2243 = vmatprep.mubr.msk.f32.mxu1 %vm435_vm1, %v362_v38 }
 0x10d   : > { %1552 = vperm.xlu1 %2495, %v1494_v55   ;;  %1577 = vperm.xlu0 %2494, %v1499_v58   ;;  %v1821_v55 = vld [vmem:[%s3223_s2 + $0x120] sm:$0xff] }
 0x10e   : > { %2244 = vmatmul.mubr.msk.f32.gmra.mrb[10].mxu1 %vm435_vm1, %v363_v39  ;;  %v1825_v58 = vld [vmem:[%s3223_s2 + $0x140] sm:$0xff] }
 0x10f   : > { %2246 = vmatprep.mubr.msk.f32.mxu1 %vm435_vm1, %v364_v40 }
 0x111   : > { %1562 = vperm.xlu1 %2495, %v1496_v57   ;;  %1587 = vperm.xlu0 %2494, %v1501_v60   ;;  %v1914_v57 = vld [vmem:[%s3223_s2 + $0x208] sm:$0xff]  ;;  %v1916_v60 = vld [vmem:[%s3223_s2 + $0x218] sm:$0xff] }
 0x112   : > { %2247 = vmatmul.mubr.msk.f32.gmra.mrb[12].mxu1 %vm435_vm1, %v365_v41 }
 0x113   : > { %2249 = vmatprep.mubr.msk.f32.mxu1 %vm435_vm1, %v366_v42 }
 0x115   : > { %1572 = vperm.xlu1 %2495, %v1498_v59   ;;  %1597 = vperm.xlu0 %2494, %v1503_v62   ;;  %v1826_v59 = vld [vmem:[%s3223_s2 + $0x148] sm:$0xff]  ;;  %v1828_v62 = vld [vmem:[%s3223_s2 + $0x158] sm:$0xff] }
 0x116   : > { %2250 = vmatmul.mubr.msk.f32.gmra.mrb[14].mxu1 %vm435_vm1, %v367_v43 }
 0x117   : > { %2252 = vmatprep.mubr.msk.f32.mxu1 %vm435_vm1, %v368_v44 }
 0x119   : > { %1582 = vperm.xlu1 %2495, %v1500_v61   ;;  %1607 = vperm.xlu0 %2494, %v1505_v0   ;;  %v1827_v61 = vld [vmem:[%s3223_s2 + $0x150] sm:$0xff]  ;;  %v1829_v0 = vld [vmem:[%s3223_s2 + $0x160] sm:$0xff] }
 0x11a   : > { %2253 = vmatmul.mubr.msk.f32.gmra.mrb[16].mxu1 %vm435_vm1, %v369_v45 }
 0x11b   : > { %2271 = vmatprep.mubr.msk.f32.mxu1 %vm435_vm1, %v1913_v46  ;;  %v1818_v46 = vld [vmem:[%s3223_s2 + $0x108] sm:$0xff] }
 0x11d   : > { %1592 = vperm.xlu1 %2495, %v1502_v63   ;;  %1617 = vperm.xlu0 %2494, %v1507_v2   ;;  %v1918_v63 = vld [vmem:[%s3223_s2 + $0x228] sm:$0xff] }
 0x11e   : > { %v1830_v2 = vld [vmem:[%s3223_s2 + $0x168] sm:$0xff] }
 0x121   : > { %1602 = vperm.xlu1 %2495, %v1504_v1   ;;  %1627 = vperm.xlu0 %2494, %v1509_v4   ;;  %v1919_v1 = vld [vmem:[%s3223_s2 + $0x230] sm:$0xff] }
 0x122   : > { %v1831_v4 = vld [vmem:[%s3223_s2 + $0x170] sm:$0xff] }
 0x125   : > { %1612 = vperm.xlu1 %2495, %v1506_v3   ;;  %1637 = vperm.xlu0 %2494, %v1511_v6   ;;  %v1920_v3 = vld [vmem:[%s3223_s2 + $0x238] sm:$0xff] }
 0x126   : > { %v1832_v6 = vld [vmem:[%s3223_s2 + $0x178] sm:$0xff] }
 0x129   : > { %1622 = vperm.xlu1 %2495, %v1508_v5   ;;  %1647 = vperm.xlu0 %2494, %v1513_v8   ;;  %v1921_v5 = vld [vmem:[%s3223_s2 + $0x240] sm:$0xff] }
 0x12a   : > { %v1833_v8 = vld [vmem:[%s3223_s2 + $0x180] sm:$0xff] }
 0x12d   : > { %1632 = vperm.xlu1 %2495, %v1510_v7   ;;  %1657 = vperm.xlu0 %2494, %v1515_v10   ;;  %v1922_v7 = vld [vmem:[%s3223_s2 + $0x248] sm:$0xff] }
 0x12e   : > { %v1834_v10 = vld [vmem:[%s3223_s2 + $0x188] sm:$0xff] }
 0x131   : > { %1642 = vperm.xlu1 %2495, %v1512_v9   ;;  %1667 = vperm.xlu0 %2494, %v1517_v13   ;;  %v1923_v9 = vld [vmem:[%s3223_s2 + $0x250] sm:$0xff]  ;;  %v1925_v13 = vld [vmem:[%s3223_s2 + $0x260] sm:$0xff] }
 0x135   : > { %1652 = vperm.xlu1 %2495, %v1514_v11   ;;  %1677 = vperm.xlu0 %2494, %v1519_v21   ;;  %v1924_v11 = vld [vmem:[%s3223_s2 + $0x258] sm:$0xff] }
 0x136   : > { %v1928_v21 = vld [vmem:[%s3223_s2 + $0x278] sm:$0xff] }
 0x139   : > { %1662 = vperm.xlu1 %2495, %v1516_v14   ;;  %v1836_v14 = vld [vmem:[%s3223_s2 + $0x198] sm:$0xff] }
 0x13d   : > { %1672 = vperm.xlu1 %2495, %v1518_v22   ;;  %v1839_v22 = vld [vmem:[%s3223_s2 + $0x1b0] sm:$0xff] }
 0x15b   : > { %v2456_v12 = vpop.permute.xlu0 %2455 }
 0x15c   : > { %v2458_v16 = vunpack.i.h.bf16 %v2456_v12  ;;  %v2457_v17 = vunpack.i.l.bf16 %v2456_v12  ;;  %v1835_v12 = vld [vmem:[%s3223_s2 + $0x190] sm:$0xff] }
 0x15e   : > { %v2323_v18 = vpack.c.bf16 %v2458_v16, %v2457_v17  ;;  %v1926_v16 = vld [vmem:[%s3223_s2 + $0x268] sm:$0xff]  ;;  %v1837_v17 = vld [vmem:[%s3223_s2 + $0x1a0] sm:$0xff] }
 0x15f   : > { %v2461_v20 = vpop.permute.xlu0 %2460 }
 0x160   : > { %v2463_v23 = vunpack.i.h.bf16 %v2461_v20  ;;  %v2462_v25 = vunpack.i.l.bf16 %v2461_v20  ;;  %2324 = vmatprep.subr.bf16.mxu0 %v2323_v18  ;;  %v1838_v20 = vld [vmem:[%s3223_s2 + $0x1a8] sm:$0xff] }
 0x161   : > { %2326 = vmatpush3.bf16.msra.mxu0 %v2323_v18  ;;  %v1927_v18 = vld [vmem:[%s3223_s2 + $0x270] sm:$0xff] }
 0x162   : > { %v2327_v26 = vpack.c.bf16 %v2463_v23, %v2462_v25  ;;  %v1929_v23 = vld [vmem:[%s3223_s2 + $0x280] sm:$0xff]  ;;  %v1840_v25 = vld [vmem:[%s3223_s2 + $0x1b8] sm:$0xff] }
 0x163   : > { %v2476_v27 = vpop.permute.xlu0 %2475  ;;  %v2466_v29 = vpop.permute.xlu1 %2465 }
 0x164   : > { %v2478_v30 = vunpack.i.h.bf16 %v2476_v27  ;;  %v2477_v31 = vunpack.i.l.bf16 %v2476_v27  ;;  %v2468_v32 = vunpack.i.h.bf16 %v2466_v29  ;;  %v2467_v33 = vunpack.i.l.bf16 %v2466_v29  ;;  %2328 = vmatprep.subr.bf16.mxu0 %v2327_v26  ;;  %v1841_v27 = vld [vmem:[%s3223_s2 + $0x1c0] sm:$0xff]  ;;  %v1931_v29 = vld [vmem:[%s3223_s2 + $0x290] sm:$0xff] }
 0x165   : > { %2330 = vmatpush3.bf16.msra.mxu0 %v2327_v26  ;;  %v1930_v26 = vld [vmem:[%s3223_s2 + $0x288] sm:$0xff] }
 0x166   : > { %v2355_v34 = vpack.c.bf16 %v2478_v30, %v2477_v31  ;;  %v2331_v35 = vpack.c.bf16 %v2468_v32, %v2467_v33  ;;  %v1842_v30 = vld [vmem:[%s3223_s2 + $0x1c8] sm:$0xff]  ;;  %v1932_v31 = vld [vmem:[%s3223_s2 + $0x298] sm:$0xff]  ;;  %v1843_v32 = vld [vmem:[%s3223_s2 + $0x1d0] sm:$0xff] }
 0x167   : > { %v2471_v36 = vpop.permute.xlu1 %2470  ;;  %v2486_v39 = vpop.permute.xlu0 %2485  ;;  %v1933_v33 = vld [vmem:[%s3223_s2 + $0x2a0] sm:$0xff] }
 0x168   : > { %v2473_v37 = vunpack.i.h.bf16 %v2471_v36  ;;  %v2472_v38 = vunpack.i.l.bf16 %v2471_v36  ;;  %2332 = vmatprep.subr.bf16.mxu0 %v2331_v35  ;;  %2356 = vmatprep.subr.bf16.mxu1 %v2355_v34  ;;  %v2488_v42 = vunpack.i.h.bf16 %v2486_v39  ;;  %v2487_v43 = vunpack.i.l.bf16 %v2486_v39  ;;  %v1845_v36 = vld [vmem:[%s3223_s2 + $0x1e0] sm:$0xff]  ;;  %v1936_v39 = vld [vmem:[%s3223_s2 + $0x2b8] sm:$0xff] }
 0x169   : > { %2334 = vmatpush3.bf16.msra.mxu0 %v2331_v35  ;;  %2358 = vmatpush3.bf16.msra.mxu1 %v2355_v34  ;;  %v1844_v34 = vld [vmem:[%s3223_s2 + $0x1d8] sm:$0xff]  ;;  %v1934_v35 = vld [vmem:[%s3223_s2 + $0x2a8] sm:$0xff] }
 0x16a   : > { %v2335_v40 = vpack.c.bf16 %v2473_v37, %v2472_v38  ;;  %v2363_v49 = vpack.c.bf16 %v2488_v42, %v2487_v43  ;;  %v1935_v37 = vld [vmem:[%s3223_s2 + $0x2b0] sm:$0xff]  ;;  %v1846_v38 = vld [vmem:[%s3223_s2 + $0x1e8] sm:$0xff]  ;;  %v1848_v42 = vld [vmem:[%s3223_s2 + $0x1f8] sm:$0xff] }
 0x16b   : > { %v2481_v41 = vpop.permute.xlu1 %2480  ;;  %v1938_v43 = vld [vmem:[%s3223_s2 + $0x2c8] sm:$0xff] }
 0x16c   : > { %v2483_v44 = vunpack.i.h.bf16 %v2481_v41  ;;  %v2482_v45 = vunpack.i.l.bf16 %v2481_v41  ;;  %2336 = vmatprep.subr.bf16.mxu0 %v2335_v40  ;;  %v1937_v41 = vld [vmem:[%s3223_s2 + $0x2c0] sm:$0xff] }
 0x16d   : > { %2338 = vmatpush3.bf16.msra.mxu0 %v2335_v40  ;;  %v1847_v40 = vld [vmem:[%s3223_s2 + $0x1f0] sm:$0xff] }
 0x16e   : > { %v2359_v47 = vpack.c.bf16 %v2483_v44, %v2482_v45  ;;  %2340 = vmatprep.subr.bf16.mxu0 %v2564_v15  ;;  %v338_v44 = vld [vmem:[%s3223_s2] sm:$0xff]  ;;  %v1939_v45 = vld [vmem:[%s3223_s2 + $0x2d0] sm:$0xff] }
 0x16f   : > { %v2491_v48 = vpop.permute.xlu1 %2490 }
 0x170   : > { %v2493_v50 = vunpack.i.h.bf16 %v2491_v48  ;;  %v2492_v51 = vunpack.i.l.bf16 %v2491_v48  ;;  %2144 = vmatmul.mubr.msk.f32.vlgmr.msra.gmra.mrb[8].mxu0 %vm435_vm1, %v1818_v46  ;;  %2360 = vmatprep.subr.bf16.mxu1 %v2359_v47  ;;  %v339_v46 = vld [vmem:[%s3223_s2 + $0x8] sm:$0xff]  ;;  %v340_v48 = vld [vmem:[%s3223_s2 + $0x10] sm:$0xff] }
 0x171   : > { %2342 = vmatpush3.bf16.msra.mxu0 %v2564_v15  ;;  %2362 = vmatpush3.bf16.msra.mxu1 %v2359_v47  ;;  %v1822_v15 = vld [vmem:[%s3223_s2 + $0x128] sm:$0xff]  ;;  %v1940_v47 = vld [vmem:[%s3223_s2 + $0x2d8] sm:$0xff] }
 0x172   : > { %2344 = vmatprep.subr.bf16.mxu0 %v2568_v19  ;;  %2364 = vmatprep.subr.bf16.mxu1 %v2363_v49  ;;  %v2367_v54 = vpack.c.bf16 %v2493_v50, %v2492_v51  ;;  %v341_v50 = vld [vmem:[%s3223_s2 + $0x18] sm:$0xff]  ;;  %v1942_v51 = vld [vmem:[%s3223_s2 + $0x2e8] sm:$0xff] }
 0x173   : > { %2146 = vmatprep.mubr.msk.f32.mxu0 %vm435_vm1, %v1819_v52  ;;  %v342_v52 = vld [vmem:[%s3223_s2 + $0x20] sm:$0xff] }
 0x174   : > { %2147 = vmatmul.mubr.msk.f32.gmra.mrb[10].mxu0 %vm435_vm1, %v1820_v53  ;;  %v1943_v53 = vld [vmem:[%s3223_s2 + $0x2f0] sm:$0xff] }
 0x175   : > { %2346 = vmatpush3.bf16.msra.mxu0 %v2568_v19  ;;  %2366 = vmatpush3.bf16.msra.mxu1 %v2363_v49  ;;  %v1824_v19 = vld [vmem:[%s3223_s2 + $0x138] sm:$0xff]  ;;  %v1941_v49 = vld [vmem:[%s3223_s2 + $0x2e0] sm:$0xff] }
 0x176   : > { %2348 = vmatprep.subr.bf16.mxu0 %v2575_v24  ;;  %2368 = vmatprep.subr.bf16.mxu1 %v2367_v54 }
 0x177   : > { %2149 = vmatprep.mubr.msk.f32.mxu0 %vm435_vm1, %v1821_v55  ;;  %v1944_v55 = vld [vmem:[%s3223_s2 + $0x2f8] sm:$0xff] }
 0x178   : > { %2150 = vmatmul.mubr.msk.f32.gmra.mrb[12].mxu0 %vm435_vm1, %v1822_v15  ;;  %v344_v15 = vld [vmem:[%s3223_s2 + $0x30] sm:$0xff] }
 0x179   : > { %2350 = vmatpush3.bf16.msra.mxu0 %v2575_v24  ;;  %2370 = vmatpush3.bf16.msra.mxu1 %v2367_v54  ;;  %v1915_v24 = vld [vmem:[%s3223_s2 + $0x210] sm:$0xff]  ;;  %v343_v54 = vld [vmem:[%s3223_s2 + $0x28] sm:$0xff] }
 0x17a   : > { %2352 = vmatprep.subr.bf16.mxu0 %v2579_v28  ;;  %2152 = vmatprep.mubr.msk.f32.mxu0 %vm435_vm1, %v1823_v56  ;;  %v345_v56 = vld [vmem:[%s3223_s2 + $0x38] sm:$0xff] }
 0x17c   : > { %2153 = vmatmul.mubr.msk.f32.gmra.mrb[14].mxu0 %vm435_vm1, %v1824_v19  ;;  %2272 = vmatmul.mubr.msk.f32.vlgmr.msra.gmra.mrb[18].mxu1 %vm435_vm1, %v1914_v57  ;;  %v346_v19 = vld [vmem:[%s3223_s2 + $0x40] sm:$0xff]  ;;  %v347_v57 = vld [vmem:[%s3223_s2 + $0x48] sm:$0xff] }
 0x17d   : > { %2354 = vmatpush3.bf16.msra.mxu0 %v2579_v28  ;;  %2155 = vmatprep.mubr.msk.f32.mxu0 %vm435_vm1, %v1825_v58  ;;  %v1917_v28 = vld [vmem:[%s3223_s2 + $0x220] sm:$0xff]  ;;  %v348_v58 = vld [vmem:[%s3223_s2 + $0x50] sm:$0xff] }
 0x17e   : > { %2274 = vmatprep.mubr.msk.f32.mxu1 %vm435_vm1, %v1915_v24  ;;  %v349_v24 = vld [vmem:[%s3223_s2 + $0x58] sm:$0xff] }
 0x180   : > { %2156 = vmatmul.mubr.msk.f32.gmra.mrb[16].mxu0 %vm435_vm1, %v1826_v59  ;;  %2275 = vmatmul.mubr.msk.f32.gmra.mrb[20].mxu1 %vm435_vm1, %v1916_v60  ;;  %v350_v59 = vld [vmem:[%s3223_s2 + $0x60] sm:$0xff]  ;;  %v351_v60 = vld [vmem:[%s3223_s2 + $0x68] sm:$0xff] }
 0x181   : > { %2158 = vmatprep.mubr.msk.f32.mxu0 %vm435_vm1, %v1827_v61  ;;  %2277 = vmatprep.mubr.msk.f32.mxu1 %vm435_vm1, %v1917_v28  ;;  %v3064_v61 = vpop.permute.xlu0 %1522  ;;  %v3066_v28 = vpop.permute.xlu1 %1527 }
 0x184   : > { %2159 = vmatmul.mubr.msk.f32.gmra.mrb[18].mxu0 %vm435_vm1, %v1828_v62  ;;  %2278 = vmatmul.mubr.msk.f32.gmra.mrb[22].mxu1 %vm435_vm1, %v1918_v63 }
 0x185   : > { %2161 = vmatprep.mubr.msk.f32.mxu0 %vm435_vm1, %v1829_v0  ;;  %2280 = vmatprep.mubr.msk.f32.mxu1 %vm435_vm1, %v1919_v1  ;;  %v3068_v62 = vpop.permute.xlu0 %1537  ;;  %v3070_v63 = vpop.permute.xlu1 %1532 }
 0x188   : > { %2162 = vmatmul.mubr.msk.f32.gmra.mrb[20].mxu0 %vm435_vm1, %v1830_v2  ;;  %2281 = vmatmul.mubr.msk.f32.gmra.mrb[24].mxu1 %vm435_vm1, %v1920_v3 }
 0x189   : > { %2164 = vmatprep.mubr.msk.f32.mxu0 %vm435_vm1, %v1831_v4  ;;  %2283 = vmatprep.mubr.msk.f32.mxu1 %vm435_vm1, %v1921_v5  ;;  %v3072_v0 = vpop.permute.xlu0 %1547  ;;  %v3074_v1 = vpop.permute.xlu1 %1542 }
 0x18c   : > { %2165 = vmatmul.mubr.msk.f32.gmra.mrb[22].mxu0 %vm435_vm1, %v1832_v6  ;;  %2284 = vmatmul.mubr.msk.f32.gmra.mrb[26].mxu1 %vm435_vm1, %v1922_v7 }
 0x18d   : > { %2167 = vmatprep.mubr.msk.f32.mxu0 %vm435_vm1, %v1833_v8  ;;  %2286 = vmatprep.mubr.msk.f32.mxu1 %vm435_vm1, %v1923_v9  ;;  %v3076_v2 = vpop.permute.xlu0 %1557  ;;  %v3078_v3 = vpop.permute.xlu1 %1552 }
 0x190   : > { %2168 = vmatmul.mubr.msk.f32.gmra.mrb[24].mxu0 %vm435_vm1, %v1834_v10  ;;  %2287 = vmatmul.mubr.msk.f32.gmra.mrb[28].mxu1 %vm435_vm1, %v1924_v11 }
 0x191   : > { %2170 = vmatprep.mubr.msk.f32.mxu0 %vm435_vm1, %v1835_v12  ;;  %2289 = vmatprep.mubr.msk.f32.mxu1 %vm435_vm1, %v1925_v13  ;;  %v3080_v4 = vpop.permute.xlu0 %1567  ;;  %v3082_v5 = vpop.permute.xlu1 %1562 }
 0x194   : > { %2171 = vmatmul.mubr.msk.f32.gmra.mrb[26].mxu0 %vm435_vm1, %v1836_v14  ;;  %2290 = vmatmul.mubr.msk.f32.gmra.mrb[30].mxu1 %vm435_vm1, %v1926_v16 }
 0x195   : > { %2173 = vmatprep.mubr.msk.f32.mxu0 %vm435_vm1, %v1837_v17  ;;  %2292 = vmatprep.mubr.msk.f32.mxu1 %vm435_vm1, %v1927_v18  ;;  %v3084_v6 = vpop.permute.xlu0 %1577  ;;  %v3086_v7 = vpop.permute.xlu1 %1572 }
 0x198   : > { %2174 = vmatmul.mubr.msk.f32.gmra.mrb[28].mxu0 %vm435_vm1, %v1838_v20  ;;  %2293 = vmatmul.mubr.msk.f32.gmra.mrb[0].mxu1 %vm435_vm1, %v1928_v21 }
 0x199   : > { %2176 = vmatprep.mubr.msk.f32.mxu0 %vm435_vm1, %v1839_v22  ;;  %2295 = vmatprep.mubr.msk.f32.mxu1 %vm435_vm1, %v1929_v23  ;;  %v3088_v8 = vpop.permute.xlu0 %1587  ;;  %v3090_v9 = vpop.permute.xlu1 %1582 }
 0x19c   : > { %2177 = vmatmul.mubr.msk.f32.gmra.mrb[30].mxu0 %vm435_vm1, %v1840_v25  ;;  %2296 = vmatmul.mubr.msk.f32.gmra.mrb[2].mxu1 %vm435_vm1, %v1930_v26 }
 0x19d   : > { %2179 = vmatprep.mubr.msk.f32.mxu0 %vm435_vm1, %v1841_v27  ;;  %2298 = vmatprep.mubr.msk.f32.mxu1 %vm435_vm1, %v1931_v29  ;;  %v1598_v12 = vpop.permute.xlu0 %1597  ;;  %v1593_v13 = vpop.permute.xlu1 %1592 }
 0x1a0   : > { %2180 = vmatmul.mubr.msk.f32.gmra.mrb[32].mxu0 %vm435_vm1, %v1842_v30  ;;  %2299 = vmatmul.mubr.msk.f32.gmra.mrb[4].mxu1 %vm435_vm1, %v1932_v31 }
 0x1a1   : > { %2182 = vmatprep.mubr.msk.f32.mxu0 %vm435_vm1, %v1843_v32  ;;  %2301 = vmatprep.mubr.msk.f32.mxu1 %vm435_vm1, %v1933_v33  ;;  %v1608_v17 = vpop.permute.xlu0 %1607  ;;  %v1603_v20 = vpop.permute.xlu1 %1602 }
 0x1a4   : > { %2183 = vmatmul.mubr.msk.f32.gmra.mrb[34].mxu0 %vm435_vm1, %v1844_v34  ;;  %2302 = vmatmul.mubr.msk.f32.gmra.mrb[6].mxu1 %vm435_vm1, %v1934_v35 }
 0x1a5   : > { %2185 = vmatprep.mubr.msk.f32.mxu0 %vm435_vm1, %v1845_v36  ;;  %2304 = vmatprep.mubr.msk.f32.mxu1 %vm435_vm1, %v1935_v37  ;;  %v1618_v25 = vpop.permute.xlu0 %1617  ;;  %v1613_v26 = vpop.permute.xlu1 %1612 }
 0x1a8   : > { %2186 = vmatmul.mubr.msk.f32.gmra.mrb[36].mxu0 %vm435_vm1, %v1846_v38  ;;  %2305 = vmatmul.mubr.msk.f32.gmra.mrb[8].mxu1 %vm435_vm1, %v1936_v39 }
 0x1a9   : > { %2188 = vmatprep.mubr.msk.f32.mxu0 %vm435_vm1, %v1847_v40  ;;  %2307 = vmatprep.mubr.msk.f32.mxu1 %vm435_vm1, %v1937_v41  ;;  %v1628_v36 = vpop.permute.xlu0 %1627  ;;  %v1623_v37 = vpop.permute.xlu1 %1622 }
 0x1ac   : > { %2189 = vmatmul.mubr.msk.f32.gmra.mrb[38].mxu0 %vm435_vm1, %v1848_v42  ;;  %2308 = vmatmul.mubr.msk.f32.gmra.mrb[10].mxu1 %vm435_vm1, %v1938_v43 }
 0x1ad   : > { %2207 = vmatprep.mubr.msk.f32.mxu0 %vm435_vm1, %v338_v44  ;;  %2310 = vmatprep.mubr.msk.f32.mxu1 %vm435_vm1, %v1939_v45 }
 0x1b0   : > { %2208 = vmatmul.mubr.msk.f32.vlgmr.msra.gmra.mrb[8].mxu0 %vm435_vm1, %v339_v46  ;;  %2311 = vmatmul.mubr.msk.f32.gmra.mrb[12].mxu1 %vm435_vm1, %v1940_v47 }
 0x1b1   : > { %2210 = vmatprep.mubr.msk.f32.mxu0 %vm435_vm1, %v340_v48  ;;  %2313 = vmatprep.mubr.msk.f32.mxu1 %vm435_vm1, %v1941_v49  ;;  %v1638_v48 = vpop.permute.xlu0 %1637  ;;  %v1633_v49 = vpop.permute.xlu1 %1632 }
 0x1b4   : > { %2211 = vmatmul.mubr.msk.f32.gmra.mrb[10].mxu0 %vm435_vm1, %v341_v50  ;;  %2314 = vmatmul.mubr.msk.f32.gmra.mrb[14].mxu1 %vm435_vm1, %v1942_v51 }
 0x1b5   : > { %2213 = vmatprep.mubr.msk.f32.mxu0 %vm435_vm1, %v342_v52  ;;  %2316 = vmatprep.mubr.msk.f32.mxu1 %vm435_vm1, %v1943_v53 }
 0x1b8   : > { %2214 = vmatmul.mubr.msk.f32.gmra.mrb[12].mxu0 %vm435_vm1, %v343_v54  ;;  %2317 = vmatmul.mubr.msk.f32.gmra.mrb[16].mxu1 %vm435_vm1, %v1944_v55 }
 0x1b9   : > { %2216 = vmatprep.mubr.msk.f32.mxu0 %vm435_vm1, %v344_v15 }
 0x1bc   : > { %2217 = vmatmul.mubr.msk.f32.gmra.mrb[14].mxu0 %vm435_vm1, %v345_v56 }
 0x1bd   : > { %2219 = vmatprep.mubr.msk.f32.mxu0 %vm435_vm1, %v346_v19 }
 0x1c0   : > { %2220 = vmatmul.mubr.msk.f32.gmra.mrb[16].mxu0 %vm435_vm1, %v347_v57 }
 0x1c1   : > { %2222 = vmatprep.mubr.msk.f32.mxu0 %vm435_vm1, %v348_v58 }
 0x1c4   : > { %2223 = vmatmul.mubr.msk.f32.gmra.mrb[18].mxu0 %vm435_vm1, %v349_v24 }
 0x1c5   : > { %2225 = vmatprep.mubr.msk.f32.mxu0 %vm435_vm1, %v350_v59 }
 0x1c8   : > { %2226 = vmatmul.mubr.msk.f32.gmra.mrb[20].mxu0 %vm435_vm1, %v351_v60 }
 0x24f   : > { %v3092_v10 = vpop.f32.mrb[18].mxu1 }
 0x250   : > { %v3094_v11 = vpop.f32.mrb[19].mxu1 }
 0x253   : > { %v3096_v14 = vpop.f32.mrb[20].mxu1 }
 0x254   : > { %v3098_v16 = vpop.f32.mrb[21].mxu1 }
 0x257   : > { %v3100_v18 = vpop.f32.mrb[22].mxu1 }
 0x258   : > { %v3102_v21 = vpop.f32.mrb[23].mxu1 }
 0x25b   : > { %v3104_v22 = vpop.f32.mrb[24].mxu1 }
 0x25c   : > { %v3106_v23 = vpop.f32.mrb[25].mxu1 }
 0x25f   : > { %v2166_v27 = vpop.f32.mrb[22].mxu0  ;;  %v3108_v29 = vpop.f32.mrb[26].mxu1 }
 0x260   : > { %v668_v30 = vpop.f32.mrb[23].mxu0  ;;  %v3110_v31 = vpop.f32.mrb[27].mxu1 }
 0x263   : > { %v2169_v32 = vpop.f32.mrb[24].mxu0  ;;  %v3112_v33 = vpop.f32.mrb[28].mxu1 }
 0x264   : > { %v678_v34 = vpop.f32.mrb[25].mxu0  ;;  %v3114_v35 = vpop.f32.mrb[29].mxu1 }
 0x267   : > { %v2172_v38 = vpop.f32.mrb[26].mxu0  ;;  %v3116_v39 = vpop.f32.mrb[30].mxu1 }
 0x268   : > { %v688_v40 = vpop.f32.mrb[27].mxu0  ;;  %v3118_v41 = vpop.f32.mrb[31].mxu1 }
 0x26b   : > { %v2175_v42 = vpop.f32.mrb[28].mxu0  ;;  %v2294_v43 = vpop.f32.mrb[0].mxu1 }
 0x26c   : > { %v2393_v44 = vadd.f32 %v2294_v43, %v2166_v27  ;;  %v698_v45 = vpop.f32.mrb[29].mxu0  ;;  %v1367_v46 = vpop.f32.mrb[1].mxu1 }
 0x26d   : > { %v2394_v47 = vadd.f32 %v1367_v46, %v668_v30  ;;  %v1648_v27 = vpop.permute.xlu0 %1647  ;;  %v1643_v30 = vpop.permute.xlu1 %1642 }
 0x26e   : > { %v1695_v50 = vadd.f32 %v2393_v44, %v1598_v12 }
 0x26f   : > { %v1694_v51 = vadd.f32 %v2394_v47, %v1593_v13  ;;  %v2178_v52 = vpop.f32.mrb[30].mxu0  ;;  %v2297_v53 = vpop.f32.mrb[2].mxu1 }
 0x270   : > { %1728 = vst.msk [vmem:[%s3124_s22 + $0x78] sm:$0xff] %vm1712_vm2, %v1695_v50  ;;  %v2395_v54 = vadd.f32 %v2297_v53, %v2169_v32  ;;  %v708_v55 = vpop.f32.mrb[31].mxu0  ;;  %v1377_v15 = vpop.f32.mrb[3].mxu1 }
 0x271   : > { %1727 = vst.msk [vmem:[%s3124_s22 + $0x70] sm:$0xff] %vm1712_vm2, %v1694_v51  ;;  %v2396_v56 = vadd.f32 %v1377_v15, %v678_v34  ;;  %v1653_v15 = vpop.permute.xlu1 %1652 }
 0x272   : > { %v1697_v19 = vadd.f32 %v2395_v54, %v1608_v17 }
 0x273   : > { %v1696_v57 = vadd.f32 %v2396_v56, %v1603_v20  ;;  %v2181_v58 = vpop.f32.mrb[32].mxu0  ;;  %v2300_v24 = vpop.f32.mrb[4].mxu1 }
 0x274   : > { %1730 = vst.msk [vmem:[%s3124_s22 + $0x88] sm:$0xff] %vm1712_vm2, %v1697_v19  ;;  %v2397_v59 = vadd.f32 %v2300_v24, %v2172_v38  ;;  %v718_v60 = vpop.f32.mrb[33].mxu0  ;;  %v1387_v12 = vpop.f32.mrb[5].mxu1 }
 0x275   : > { %1729 = vst.msk [vmem:[%s3124_s22 + $0x80] sm:$0xff] %vm1712_vm2, %v1696_v57  ;;  %v2398_v13 = vadd.f32 %v1387_v12, %v688_v40 }
 0x276   : > { %v1699_v32 = vadd.f32 %v2397_v59, %v1618_v25 }
 0x277   : > { %v1698_v43 = vadd.f32 %v2398_v13, %v1613_v26  ;;  %v2184_v34 = vpop.f32.mrb[34].mxu0  ;;  %v2303_v17 = vpop.f32.mrb[6].mxu1 }
 0x278   : > { %1732 = vst.msk [vmem:[%s3124_s22 + $0x98] sm:$0xff] %vm1712_vm2, %v1699_v32  ;;  %v2399_v20 = vadd.f32 %v2303_v17, %v2175_v42  ;;  %v728_v44 = vpop.f32.mrb[35].mxu0  ;;  %v1397_v46 = vpop.f32.mrb[7].mxu1 }
 0x279   : > { %1731 = vst.msk [vmem:[%s3124_s22 + $0x90] sm:$0xff] %vm1712_vm2, %v1698_v43  ;;  %v2400_v38 = vadd.f32 %v1397_v46, %v698_v45  ;;  %v1658_v42 = vpop.permute.xlu0 %1657 }
 0x27a   : > { %v1701_v47 = vadd.f32 %v2399_v20, %v1628_v36 }
 0x27b   : > { %v1700_v50 = vadd.f32 %v2400_v38, %v1623_v37  ;;  %v2187_v40 = vpop.f32.mrb[36].mxu0  ;;  %v2306_v51 = vpop.f32.mrb[8].mxu1 }
 0x27c   : > { %1734 = vst.msk [vmem:[%s3124_s22 + $0xa8] sm:$0xff] %vm1712_vm2, %v1701_v47  ;;  %v2401_v25 = vadd.f32 %v2306_v51, %v2178_v52  ;;  %v738_v26 = vpop.f32.mrb[37].mxu0  ;;  %v1407_v53 = vpop.f32.mrb[9].mxu1 }
 0x27d   : > { %1733 = vst.msk [vmem:[%s3124_s22 + $0xa0] sm:$0xff] %vm1712_vm2, %v1700_v50  ;;  %v2402_v54 = vadd.f32 %v1407_v53, %v708_v55 }
 0x27e   : > { %v1703_v56 = vadd.f32 %v2401_v25, %v1638_v48 }
 0x27f   : > { %v1702_v19 = vadd.f32 %v2402_v54, %v1633_v49  ;;  %v2190_v45 = vpop.f32.mrb[38].mxu0  ;;  %v2309_v36 = vpop.f32.mrb[10].mxu1 }
 0x280   : > { %1736 = vst.msk [vmem:[%s3124_s22 + $0xb8] sm:$0xff] %vm1712_vm2, %v1703_v56  ;;  %v2403_v37 = vadd.f32 %v2309_v36, %v2181_v58  ;;  %v748_v57 = vpop.f32.mrb[39].mxu0  ;;  %v1417_v24 = vpop.f32.mrb[11].mxu1 }
 0x281   : > { %1735 = vst.msk [vmem:[%s3124_s22 + $0xb0] sm:$0xff] %vm1712_vm2, %v1702_v19  ;;  %v2404_v52 = vadd.f32 %v1417_v24, %v718_v60  ;;  %v1668_v60 = vpop.permute.xlu0 %1667 }
 0x282   : > { %v1705_v59 = vadd.f32 %v2403_v37, %v1648_v27  ;;  %v1663_v27 = vpop.permute.xlu1 %1662 }
 0x283   : > { %v1704_v12 = vadd.f32 %v2404_v52, %v1643_v30  ;;  %v2209_v13 = vpop.f32.mrb[8].mxu0  ;;  %v2312_v55 = vpop.f32.mrb[12].mxu1 }
 0x284   : > { %1738 = vst.msk [vmem:[%s3124_s22 + $0xc8] sm:$0xff] %vm1712_vm2, %v1705_v59  ;;  %v2379_v48 = vadd.f32 %v3092_v10, %v2209_v13  ;;  %v2405_v49 = vadd.f32 %v2312_v55, %v2184_v34  ;;  %v919_v32 = vpop.f32.mrb[9].mxu0  ;;  %v1427_v43 = vpop.f32.mrb[13].mxu1 }
 0x285   : > { %1737 = vst.msk [vmem:[%s3124_s22 + $0xc0] sm:$0xff] %vm1712_vm2, %v1704_v12  ;;  %v2380_v58 = vadd.f32 %v3094_v11, %v919_v32  ;;  %v2406_v17 = vadd.f32 %v1427_v43, %v728_v44 }
 0x286   : > { %v1681_v30 = vadd.f32 %v2379_v48, %v3066_v28  ;;  %v1707_v20 = vadd.f32 %v2405_v49, %v1658_v42  ;;  %v1673_v19 = vpop.permute.xlu1 %1672 }
 0x287   : > { %v1680_v46 = vadd.f32 %v2380_v58, %v3064_v61  ;;  %v1706_v38 = vadd.f32 %v2406_v17, %v1653_v15  ;;  %v2212_v10 = vpop.f32.mrb[10].mxu0  ;;  %v2315_v47 = vpop.f32.mrb[14].mxu1 }
 0x288   : > { %1714 = vst.msk [vmem:[%s3124_s22 + $0x8] sm:$0xff] %vm1712_vm2, %v1681_v30  ;;  %1740 = vst.msk [vmem:[%s3124_s22 + $0xd8] sm:$0xff] %vm1712_vm2, %v1707_v20  ;;  %v2381_v11 = vadd.f32 %v3096_v14, %v2212_v10  ;;  %v2407_v34 = vadd.f32 %v2315_v47, %v2187_v40  ;;  %v929_v44 = vpop.f32.mrb[11].mxu0  ;;  %v1437_v50 = vpop.f32.mrb[15].mxu1 }
 0x289   : > { %1713 = vst.msk [vmem:[%s3124_s22] sm:$0xff] %vm1712_vm2, %v1680_v46  ;;  %1739 = vst.msk [vmem:[%s3124_s22 + $0xd0] sm:$0xff] %vm1712_vm2, %v1706_v38  ;;  %v2382_v61 = vadd.f32 %v3098_v16, %v929_v44  ;;  %v2408_v28 = vadd.f32 %v1437_v50, %v738_v26  ;;  %v1678_v26 = vpop.permute.xlu0 %1677 }
 0x28a   : > { %v1683_v51 = vadd.f32 %v2381_v11, %v3068_v62  ;;  %v1709_v25 = vadd.f32 %v2407_v34, %v1668_v60 }
 0x28b   : > { %v1682_v53 = vadd.f32 %v2382_v61, %v3070_v63  ;;  %v1708_v54 = vadd.f32 %v2408_v28, %v1663_v27  ;;  %v2215_v42 = vpop.f32.mrb[12].mxu0  ;;  %v2318_v14 = vpop.f32.mrb[16].mxu1 }
 0x28c   : > { %1716 = vst.msk [vmem:[%s3124_s22 + $0x18] sm:$0xff] %vm1712_vm2, %v1683_v51  ;;  %1742 = vst.msk [vmem:[%s3124_s22 + $0xe8] sm:$0xff] %vm1712_vm2, %v1709_v25  ;;  %v2383_v40 = vadd.f32 %v3100_v18, %v2215_v42  ;;  %v2409_v15 = vadd.f32 %v2318_v14, %v2190_v45  ;;  %v939_v16 = vpop.f32.mrb[13].mxu0  ;;  %v1447_v56 = vpop.f32.mrb[17].mxu1 }
 0x28d   : > { %1715 = vst.msk [vmem:[%s3124_s22 + $0x10] sm:$0xff] %vm1712_vm2, %v1682_v53  ;;  %1741 = vst.msk [vmem:[%s3124_s22 + $0xe0] sm:$0xff] %vm1712_vm2, %v1708_v54  ;;  %v2384_v62 = vadd.f32 %v3102_v21, %v939_v16  ;;  %v2410_v63 = vadd.f32 %v1447_v56, %v748_v57 }
 0x28e   : > { %v1685_v36 = vadd.f32 %v2383_v40, %v3072_v0  ;;  %v1711_v37 = vadd.f32 %v2409_v15, %v1678_v26 }
 0x28f   : > { %v1684_v18 = vadd.f32 %v2384_v62, %v3074_v1  ;;  %v1710_v45 = vadd.f32 %v2410_v63, %v1673_v19  ;;  %v2218_v24 = vpop.f32.mrb[14].mxu0 }
 0x290   : > { %1718 = vst.msk [vmem:[%s3124_s22 + $0x28] sm:$0xff] %vm1712_vm2, %v1685_v36  ;;  %1744 = vst.msk [vmem:[%s3124_s22 + $0xf8] sm:$0xff] %vm1712_vm2, %v1711_v37  ;;  %v2385_v52 = vadd.f32 %v3104_v22, %v2218_v24  ;;  %v949_v59 = vpop.f32.mrb[15].mxu0 }
 0x291   : > { %1717 = vst.msk [vmem:[%s3124_s22 + $0x20] sm:$0xff] %vm1712_vm2, %v1684_v18  ;;  %1743 = vst.msk [vmem:[%s3124_s22 + $0xf0] sm:$0xff] %vm1712_vm2, %v1710_v45  ;;  %v2386_v0 = vadd.f32 %v3106_v23, %v949_v59 }
 0x292   : > { %v1687_v1 = vadd.f32 %v2385_v52, %v3076_v2 }
 0x293   : > { %v1686_v21 = vadd.f32 %v2386_v0, %v3078_v3  ;;  %v2221_v57 = vpop.f32.mrb[16].mxu0 }
 0x294   : > { %1720 = vst.msk [vmem:[%s3124_s22 + $0x38] sm:$0xff] %vm1712_vm2, %v1687_v1  ;;  %v2387_v12 = vadd.f32 %v3108_v29, %v2221_v57  ;;  %v959_v22 = vpop.f32.mrb[17].mxu0 }
 0x295   : > { %1719 = vst.msk [vmem:[%s3124_s22 + $0x30] sm:$0xff] %vm1712_vm2, %v1686_v21  ;;  %v2388_v13 = vadd.f32 %v3110_v31, %v959_v22 }
 0x296   : > { %v1689_v55 = vadd.f32 %v2387_v12, %v3080_v4 }
 0x297   : > { %v1688_v23 = vadd.f32 %v2388_v13, %v3082_v5  ;;  %v2224_v48 = vpop.f32.mrb[18].mxu0 }
 0x298   : > { %1722 = vst.msk [vmem:[%s3124_s22 + $0x48] sm:$0xff] %vm1712_vm2, %v1689_v55  ;;  %v2389_v2 = vadd.f32 %v3112_v33, %v2224_v48  ;;  %v969_v3 = vpop.f32.mrb[19].mxu0 }
 0x299   : > { %1721 = vst.msk [vmem:[%s3124_s22 + $0x40] sm:$0xff] %vm1712_vm2, %v1688_v23  ;;  %v2390_v29 = vadd.f32 %v3114_v35, %v969_v3 }
 0x29a   : > { %v1691_v49 = vadd.f32 %v2389_v2, %v3084_v6 }
 0x29b   : > { %v1690_v31 = vadd.f32 %v2390_v29, %v3086_v7  ;;  %v2227_v32 = vpop.f32.mrb[20].mxu0 }
 0x29c   : > { %1724 = vst.msk [vmem:[%s3124_s22 + $0x58] sm:$0xff] %vm1712_vm2, %v1691_v49  ;;  %v2391_v4 = vadd.f32 %v3116_v39, %v2227_v32  ;;  %v979_v5 = vpop.f32.mrb[21].mxu0 }
 0x29d   : > { %1723 = vst.msk [vmem:[%s3124_s22 + $0x50] sm:$0xff] %vm1712_vm2, %v1690_v31  ;;  %v2392_v43 = vadd.f32 %v3118_v41, %v979_v5 }
 0x29e   : > { %v1693_v33 = vadd.f32 %v2391_v4, %v3088_v8 }
 0x29f   : > { %v1692_v58 = vadd.f32 %v2392_v43, %v3090_v9 }
 0x2a0   : > { %1726 = vst.msk [vmem:[%s3124_s22 + $0x68] sm:$0xff] %vm1712_vm2, %v1693_v33 }
 0x2a1   : > { %1725 = vst.msk [vmem:[%s3124_s22 + $0x60] sm:$0xff] %vm1712_vm2, %v1692_v58 }
 0x2a2 PF: > { %s14_s15 = sadd.s32 1, %s2502_s15  }
 0x2a3   : > { %p11_p4 = scmp.ge.s32.totalorder %s14_s15, 4  }
 0x2a5   :  { %13 = sbr.rel (!%p11_p4) target bundleno = 1 (0x1), region = 68 }

</bundles_post_ra>
